<compile_context>
chip_gen: v5e
topology: v5e:2x2
jax: 0.10.0
libtpu: 0.0.40
codegen_flags: <defaults>
</compile_context>

<pallas_src>
import jax
import jax.numpy as jnp
from jax.experimental import pallas as pl
from jax.experimental.pallas import tpu as pltpu


def _round_up(x, m):
    return ((x + m - 1) // m) * m


def timeblock_kernel(x_ref, w_ref, b_ref, o_ref):
    # x_ref: (RB, T, Cin)        native dtype
    # w_ref: (K, Cin, 2*Cpad)    native dtype; [..., :Cpad] = w1+w3, rest = w2
    # b_ref: (1, 2*Cpad)         f32 fused bias
    # o_ref: (RB, T_out, Cpad)   Cpad = round_up(Cout, 128) -> lane-dense store
    K = w_ref.shape[0]
    T_out = o_ref.shape[1]
    cpad = o_ref.shape[2]

    dn = (((2,), (0,)), ((), ()))
    # k = 0 tap initializes the f32 accumulator; bias folded into the init.
    acc = jax.lax.dot_general(
        x_ref[:, 0:T_out, :], w_ref[0], dimension_numbers=dn,
        preferred_element_type=jnp.float32) + b_ref[...]
    for k in range(1, K):  # static unroll over the remaining temporal taps
        acc = acc + jax.lax.dot_general(
            x_ref[:, k:k + T_out, :], w_ref[k], dimension_numbers=dn,
            preferred_element_type=jnp.float32)

    c13 = acc[..., :cpad]          # conv1 + conv3 (merged, both linear)
    c2 = acc[..., cpad:]           # conv2
    # sigmoid(c2) = 1 / (1 + exp(-c2)); exp and the approximate reciprocal
    # both execute on the otherwise-idle EUP slot instead of the VALU.
    sig = pl.reciprocal(1.0 + jnp.exp(-c2), approx=True)
    o_ref[...] = jnp.maximum(c13 + sig, 0.0).astype(o_ref.dtype)


def _choose_row_block(R, T, T_out, Cin, cpad, itemsize, budget_bytes):
    """Largest divisor of R whose double-buffered per-step footprint fits."""
    def step_bytes(rb):
        x_buf = 2 * rb * T * Cin * itemsize          # double-buffered input
        o_buf = 2 * rb * T_out * cpad * itemsize     # double-buffered output
        acc = rb * T_out * 2 * cpad * 4              # f32 fused accumulator
        return x_buf + o_buf + acc

    divisors = [d for d in range(1, R + 1) if R % d == 0]
    fitting = [d for d in divisors if step_bytes(d) <= budget_bytes] or [1]
    for min_steps in (4, 2, 1):  # prefer a real pipeline / megacore sharding
        cand = [d for d in fitting if R // d >= min_steps]
        if cand:
            return max(cand)
    return 1


def timeblock_forward(x, params, *, row_block=None,
                      vmem_budget_bytes=12 * 1024 * 1024,
                      vmem_limit_bytes=None):
    """x: (B, N, T, C_in) -> (B, N, T_out, C_out)."""
    (w1, b1), (w2, b2), (w3, b3) = params
    B, N, T, Cin = x.shape
    Cout, _, _, K = w1.shape
    T_out = T - K + 1
    R = B * N
    cpad = _round_up(max(Cout, 128), 128)   # lane-dense output width
    pad = cpad - Cout

    xr = x.reshape(R, T, Cin)

    def prep_w(w):  # (Cout, Cin, 1, K) -> (K, Cin, Cout)
        return jnp.transpose(w[:, :, 0, :], (2, 1, 0))

    # conv1 + conv3 merged (both linear, summed before the relu); then fused
    # with conv2 along the output axis into a single weight slab.
    w13 = prep_w(w1) + prep_w(w3)
    w2k = prep_w(w2)
    wf = jnp.concatenate(
        [jnp.pad(w13, ((0, 0), (0, 0), (0, pad))),
         jnp.pad(w2k, ((0, 0), (0, 0), (0, pad)))],
        axis=-1).astype(x.dtype)                               # (K, Cin, 2*cpad)
    bf = jnp.concatenate(
        [jnp.pad(b1 + b3, (0, pad)), jnp.pad(b2, (0, pad))]
    ).astype(jnp.float32).reshape(1, 2 * cpad)

    if row_block is None:
        row_block = _choose_row_block(R, T, T_out, Cin, cpad,
                                      x.dtype.itemsize, vmem_budget_bytes)
    assert R % row_block == 0, (R, row_block)

    compiler_kwargs = dict(dimension_semantics=("parallel",))
    if vmem_limit_bytes is not None:  # raise when tuning bigger tiles (v6e)
        compiler_kwargs["vmem_limit_bytes"] = int(vmem_limit_bytes)

    out = pl.pallas_call(
        timeblock_kernel,
        out_shape=jax.ShapeDtypeStruct((R, T_out, cpad), x.dtype),
        grid=(R // row_block,),
        in_specs=[
            pl.BlockSpec((row_block, T, Cin), lambda i: (i, 0, 0)),
            pl.BlockSpec((K, Cin, 2 * cpad), lambda i: (0, 0, 0)),
            pl.BlockSpec((1, 2 * cpad), lambda i: (0, 0)),
        ],
        out_specs=pl.BlockSpec((row_block, T_out, cpad), lambda i: (i, 0, 0)),
        compiler_params=pltpu.CompilerParams(**compiler_kwargs),
    )(xr, wf, bf)

    # Strip the lane padding and restore the (B, N, T_out, Cout) layout.
    return out[:, :, :Cout].reshape(B, N, T_out, Cout)


def timeblock_reference(x, params):
    """Plain-JAX reference matching the PyTorch forward."""
    (w1, b1), (w2, b2), (w3, b3) = params
    B, N, T, Cin = x.shape

    def conv(w, b):
        Cout, _, _, K = w.shape
        T_out = T - K + 1
        acc = jnp.zeros((B, N, T_out, Cout), jnp.float32)
        for k in range(K):
            acc = acc + jnp.einsum('bntc,oc->bnto',
                                   x[:, :, k:k + T_out, :], w[:, :, 0, k])
        return acc + b

    c1, c2, c3 = conv(w1, b1), conv(w2, b2), conv(w3, b3)
    return jnp.maximum(c1 + jax.nn.sigmoid(c2) + c3, 0.0)


def init_params(key, in_channels, out_channels, kernel_size):
    """Deterministic init mimicking nn.Conv2d default uniform bounds."""
    bound = 1.0 / (in_channels * kernel_size) ** 0.5
    params = []
    for i in range(3):
        kw, kb = jax.random.split(jax.random.fold_in(key, i))
        w = jax.random.uniform(kw, (out_channels, in_channels, 1, kernel_size),
                               jnp.float32, -bound, bound)
        b = jax.random.uniform(kb, (out_channels,), jnp.float32, -bound, bound)
        params.append((w, b))
    return tuple(params)


if __name__ == "__main__":
    B, N, T, Cin, Cout, K = 2, 16, 8, 4, 32, 3

    key = jax.random.PRNGKey(0)
    kx, kp = jax.random.split(key)
    x = jax.random.normal(kx, (B, N, T, Cin), jnp.float32)
    params = init_params(kp, Cin, Cout, K)

    out = jax.block_until_ready(timeblock_forward(x, params))
    ref = timeblock_reference(x, params)

    assert out.shape == (B, N, T - K + 1, Cout)
    # Approximate-reciprocal sigmoid (EUP) -> slightly looser tolerance than
    # the exact-f32 path; accumulation itself is exact f32.
    err = float(jnp.max(jnp.abs(out - ref)))
    assert jnp.allclose(out, ref, atol=2e-3, rtol=2e-3), err
    print("KERNEL_OK")
</pallas_src>

<mosaic_0001>
module attributes {stable_mosaic.version = 11 : i64} {
  func.func @timeblock_kernel(%arg0: i32, %arg1: memref<8x8x4xf32, #tpu.memory_space<vmem>>, %arg2: memref<3x4x256xf32, #tpu.memory_space<vmem>>, %arg3: memref<1x256xf32, #tpu.memory_space<vmem>>, %arg4: memref<8x6x128xf32, #tpu.memory_space<vmem>>) attributes {dimension_semantics = [#tpu.dimension_semantics<parallel>], iteration_bounds = array<i64: 4>, scalar_prefetch = 0 : i64, scratch_operands = 0 : i64, tpu.core_type = #tpu.core_type<tc>, window_params = [{transform_indices = @transform_0, window_bounds = array<i64: 8, 8, 4>}, {pipeline_mode = #tpu.pipeline_mode<synchronous>, transform_indices = @transform_1, window_bounds = array<i64: 3, 4, 256>}, {pipeline_mode = #tpu.pipeline_mode<synchronous>, transform_indices = @transform_2, window_bounds = array<i64: 1, 256>}, {transform_indices = @transform_3, window_bounds = array<i64: 8, 6, 128>}]} {
    %c0 = arith.constant 0 : index
    %c0_0 = arith.constant 0 : index
    %c0_1 = arith.constant 0 : index
    %0 = vector.load %arg1[%c0, %c0_0, %c0_1] : memref<8x8x4xf32, #tpu.memory_space<vmem>>, vector<8x6x4xf32>
    %c0_2 = arith.constant 0 : index
    %c0_3 = arith.constant 0 : index
    %c0_4 = arith.constant 0 : index
    %1 = vector.load %arg2[%c0_2, %c0_3, %c0_4] : memref<3x4x256xf32, #tpu.memory_space<vmem>>, vector<1x4x256xf32>
    %2 = vector.shape_cast %1 : vector<1x4x256xf32> to vector<4x256xf32>
    %cst = arith.constant dense<0.000000e+00> : vector<8x6x256xf32>
    %3 = tpu.matmul %0, %2, %cst {dimension_numbers = #tpu.dot_dimension_numbers<[2], [0], [0, 1], [1], [0, 0, 0, 1, 1, 1], [], []>} : vector<8x6x4xf32>, vector<4x256xf32>, vector<8x6x256xf32> -> vector<8x6x256xf32>
    %c0_5 = arith.constant 0 : index
    %c0_6 = arith.constant 0 : index
    %4 = vector.load %arg3[%c0_5, %c0_6] : memref<1x256xf32, #tpu.memory_space<vmem>>, vector<1x256xf32>
    %5 = vector.shape_cast %4 : vector<1x256xf32> to vector<1x1x256xf32>
    %6 = vector.broadcast %5 : vector<1x1x256xf32> to vector<8x6x256xf32>
    %7 = arith.addf %3, %6 : vector<8x6x256xf32>
    %c0_7 = arith.constant 0 : index
    %c1 = arith.constant 1 : index
    %c0_8 = arith.constant 0 : index
    %8 = vector.load %arg1[%c0_7, %c1, %c0_8] : memref<8x8x4xf32, #tpu.memory_space<vmem>>, vector<8x6x4xf32>
    %c1_9 = arith.constant 1 : index
    %c0_10 = arith.constant 0 : index
    %c0_11 = arith.constant 0 : index
    %9 = vector.load %arg2[%c1_9, %c0_10, %c0_11] : memref<3x4x256xf32, #tpu.memory_space<vmem>>, vector<1x4x256xf32>
    %10 = vector.shape_cast %9 : vector<1x4x256xf32> to vector<4x256xf32>
    %cst_12 = arith.constant dense<0.000000e+00> : vector<8x6x256xf32>
    %11 = tpu.matmul %8, %10, %cst_12 {dimension_numbers = #tpu.dot_dimension_numbers<[2], [0], [0, 1], [1], [0, 0, 0, 1, 1, 1], [], []>} : vector<8x6x4xf32>, vector<4x256xf32>, vector<8x6x256xf32> -> vector<8x6x256xf32>
    %12 = arith.addf %7, %11 : vector<8x6x256xf32>
    %c0_13 = arith.constant 0 : index
    %c2 = arith.constant 2 : index
    %c0_14 = arith.constant 0 : index
    %13 = vector.load %arg1[%c0_13, %c2, %c0_14] : memref<8x8x4xf32, #tpu.memory_space<vmem>>, vector<8x6x4xf32>
    %c2_15 = arith.constant 2 : index
    %c0_16 = arith.constant 0 : index
    %c0_17 = arith.constant 0 : index
    %14 = vector.load %arg2[%c2_15, %c0_16, %c0_17] : memref<3x4x256xf32, #tpu.memory_space<vmem>>, vector<1x4x256xf32>
    %15 = vector.shape_cast %14 : vector<1x4x256xf32> to vector<4x256xf32>
    %cst_18 = arith.constant dense<0.000000e+00> : vector<8x6x256xf32>
    %16 = tpu.matmul %13, %15, %cst_18 {dimension_numbers = #tpu.dot_dimension_numbers<[2], [0], [0, 1], [1], [0, 0, 0, 1, 1, 1], [], []>} : vector<8x6x4xf32>, vector<4x256xf32>, vector<8x6x256xf32> -> vector<8x6x256xf32>
    %17 = arith.addf %12, %16 : vector<8x6x256xf32>
    %18 = vector.extract_strided_slice %17 {offsets = [0, 0, 0], sizes = [8, 6, 128], strides = [1, 1, 1]} : vector<8x6x256xf32> to vector<8x6x128xf32>
    %19 = vector.extract_strided_slice %17 {offsets = [0, 0, 128], sizes = [8, 6, 128], strides = [1, 1, 1]} : vector<8x6x256xf32> to vector<8x6x128xf32>
    %cst_19 = arith.constant 0.000000e+00 : f32
    %20 = vector.broadcast %cst_19 : f32 to vector<8x6x128xf32>
    %21 = arith.subf %20, %19 : vector<8x6x128xf32>
    %22 = math.exp %21 : vector<8x6x128xf32>
    %cst_20 = arith.constant 1.000000e+00 : f32
    %23 = vector.broadcast %cst_20 : f32 to vector<8x6x128xf32>
    %24 = arith.addf %23, %22 : vector<8x6x128xf32>
    %25 = tpu.reciprocal %24 {approx = true} : vector<8x6x128xf32> -> vector<8x6x128xf32>
    %26 = arith.addf %18, %25 : vector<8x6x128xf32>
    %cst_21 = arith.constant 0.000000e+00 : f32
    %27 = vector.broadcast %cst_21 : f32 to vector<8x6x128xf32>
    %28 = arith.maximumf %26, %27 : vector<8x6x128xf32>
    %c0_22 = arith.constant 0 : index
    %c0_23 = arith.constant 0 : index
    %c0_24 = arith.constant 0 : index
    %29 = vector.load %arg4[%c0_22, %c0_23, %c0_24] : memref<8x6x128xf32, #tpu.memory_space<vmem>>, vector<8x6x128xf32>
    tpu.vector_store %arg4[%c0_22, %c0_23, %c0_24], %28 {strides = array<i32>} : memref<8x6x128xf32, #tpu.memory_space<vmem>>, vector<8x6x128xf32>,
    return
  }
  func.func @transform_0(%arg0: i32) -> (i32, i32, i32) {
    %c0_i32 = arith.constant 0 : i32
    %c0_i32_0 = arith.constant 0 : i32
    %c0_i32_1 = arith.constant 0 : i32
    return %arg0, %c0_i32, %c0_i32_0 : i32, i32, i32
  }
  func.func @transform_1(%arg0: i32) -> (i32, i32, i32) {
    %c0_i32 = arith.constant 0 : i32
    %c0_i32_0 = arith.constant 0 : i32
    %c0_i32_1 = arith.constant 0 : i32
    %c0_i32_2 = arith.constant 0 : i32
    return %c0_i32, %c0_i32_0, %c0_i32_1 : i32, i32, i32
  }
  func.func @transform_2(%arg0: i32) -> (i32, i32) {
    %c0_i32 = arith.constant 0 : i32
    %c0_i32_0 = arith.constant 0 : i32
    %c0_i32_1 = arith.constant 0 : i32
    return %c0_i32, %c0_i32_0 : i32, i32
  }
  func.func @transform_3(%arg0: i32) -> (i32, i32, i32) {
    %c0_i32 = arith.constant 0 : i32
    %c0_i32_0 = arith.constant 0 : i32
    %c0_i32_1 = arith.constant 0 : i32
    return %arg0, %c0_i32, %c0_i32_0 : i32, i32, i32
  }
}

</mosaic_0001>

<bundles_post_ra>
// kernel: tpu_custom_call.1
= control target key start
LH: loop header
LB: loop body
LE: loop exit
PB: predicated region body
PF: predicated region fallthrough
CT: control target
= control target key end

     0   :  { %s1589_s12 = smov 0   ;;  %s2093_s0 = inlined_call_operand.vmem [shape: f32[32,8,4], index: 0, kind: input, shape index: {}]   ;;  %s2094_s1 = inlined_call_operand.vmem [shape: f32[3,4,256], index: 1, kind: input, shape index: {}]   ;;  %s2095_s2 = inlined_call_operand.vmem [shape: f32[1,256], index: 2, kind: input, shape index: {}]   ;;  %s2096_s3 = inlined_call_operand.vmem [shape: f32[32,6,128], index: 3, kind: output, shape index: {}]  }
   0x1 LB: > { %s1400_s13 = sadd.s32 4294967295, %s1567_s12   ;;  %p1404_p0 = scmp.ge.s32.totalorder %s1567_s12, 1  ;;  %s1567_s12 = sphi %s1589_s12, %s13_s12  }
   0x2   : > { %p138_p1 = scmp.lt.s32.totalorder %s1567_s12, 5 }
   0x4   : > { %p139_p2 = pnand %p1404_p0, %p138_p1 }
   0x5   : > { %s1405_s14 = sshll.u32 (!%p139_p2), %s1400_s13, 3 }
   0x6   : > { %142 = sbr.rel (%p139_p2) target bundleno = 399 (0x18f), region = 32  ;;  %p163_p3 = scmp.lt.s32.totalorder (!%p139_p2), %s1405_s14, 31 }
   0xb   : > { %s2098_s14 = smov (!%p163_p3, %s1405_s14), 31  ;;  %v183_v21 = vld [vmem:[%s2095_s2] sm:$0x3]  ;;  %vm214_vm0 = vcmask 1043458   ;;  %vm217_vm1 = vcmask 1045508   ;;  %vm212_vm2 = vcmask 1041408  }
   0xc   : > { %s1406_s15 = sshll.u32 %s2098_s14, 3  ;;  %v186_v27 = vperm.slane %v183_v21, 1  ;;  %v185_v30 = vperm.slane %v183_v21, 0  ;;  %v182_v32 = vld [vmem:[%s2094_s1] sm:$0xff]  ;;  %vm329_vm3 = vcmask 1043456   ;;  %vm316_vm4 = vcmask 31744  }
   0xd   : > { %s1605_s18 = scalar_lea.vmem %s2093_s0, %s1406_s15  ;;  %vm427_vm5 = vcmask 1045504   ;;  %s2020_s29 = scalar_lea.vmem %s2096_s3, %s1406_s15 }
   0xe   : > { %v174_v0 = vld [vmem:[%s1605_s18] sm:$0x3f]  ;;  %v175_v1 = vld [vmem:[%s1605_s18 + $0x8] sm:$0x3f]  ;;  %v176_v6 = vld [vmem:[%s1605_s18 + $0x10] sm:$0x3f] }
   0xf   : > { %v195_v2 = vrot.slane %v174_v0, 2  ;;  %v196_v3 = vrot.slane %v174_v0, 4  ;;  %v197_v4 = vrot.slane %v175_v1, 2  ;;  %220 = vst [vmem:[#allocation1] ss:$4 sm:$0xff] %v174_v0  ;;  %v198_v5 = vrot.slane %v175_v1, 4 }
  0x10   : > { %v199_v7 = vrot.slane %v176_v6, 2  ;;  %226 = vst [vmem:[#allocation1 + $0x3] ss:$4 sm:$0xff] %v175_v1  ;;  %v177_v8 = vld [vmem:[%s1605_s18 + $0x18] sm:$0x3f]  ;;  %v200_v9 = vrot.slane %v176_v6, 4 }
  0x11   : > { %222 = vst [vmem:[#allocation1 + $0x1] ss:$4 sm:$0xff] %v195_v2  ;;  %v178_v10 = vld [vmem:[%s1605_s18 + $0x20] sm:$0x3f]  ;;  %v201_v11 = vrot.slane %v177_v8, 2  ;;  %v202_v12 = vrot.slane %v177_v8, 4 }
  0x12   : > { %224 = vst [vmem:[#allocation1 + $0x2] ss:$4 sm:$0xff] %v196_v3  ;;  %v203_v14 = vrot.slane %v178_v10, 2  ;;  %v204_v15 = vrot.slane %v178_v10, 4  ;;  %v179_v17 = vld [vmem:[%s1605_s18 + $0x28] sm:$0x3f] }
  0x13   : > { %228 = vst [vmem:[#allocation1 + $0x20] ss:$4 sm:$0xff] %v197_v4  ;;  %v180_v18 = vld [vmem:[%s1605_s18 + $0x30] sm:$0x3f]  ;;  %v205_v19 = vrot.slane %v179_v17, 2  ;;  %v206_v20 = vrot.slane %v179_v17, 4 }
  0x14   : > { %230 = vst [vmem:[#allocation1 + $0x21] ss:$4 sm:$0xff] %v198_v5  ;;  %v207_v22 = vrot.slane %v180_v18, 2  ;;  %v181_v24 = vld [vmem:[%s1605_s18 + $0x38] sm:$0x3f]  ;;  %v208_v25 = vrot.slane %v180_v18, 4 }
  0x15   : > { %232 = vst [vmem:[#allocation1 + $0x22] ss:$4 sm:$0xff] %v176_v6  ;;  %v209_v26 = vrot.slane %v181_v24, 2  ;;  %v210_v29 = vrot.slane %v181_v24, 4  ;;  %v211_v31 = vrot.slane %v186_v27, 6 }
  0x16   : > { %234 = vst [vmem:[#allocation1 + $0x23] ss:$4 sm:$0xff] %v199_v7  ;;  %v489_v48 = vld [vmem:[%s1605_s18 + $0x1] sm:$0x3f]  ;;  %v490_v53 = vld [vmem:[%s1605_s18 + $0x9] sm:$0x3f] }
  0x17   : > { %v215_v34 = vsel %vm214_vm0, %v185_v30, %v211_v31  ;;  %v218_v35 = vsel %vm217_vm1, %v185_v30, %v211_v31  ;;  %v213_v39 = vsel %vm212_vm2, %v185_v30, %v211_v31  ;;  %v507_v49 = vrot.slane %v489_v48, 2  ;;  %v491_v54 = vld [vmem:[%s1605_s18 + $0x11] sm:$0x3f]  ;;  %v492_v57 = vld [vmem:[%s1605_s18 + $0x19] sm:$0x3f] }
  0x18   : > { %v1627_v36 = vrot.slane %v215_v34, 2  ;;  %v1629_v38 = vrot.slane %v218_v35, 4  ;;  %v508_v50 = vrot.slane %v489_v48, 4  ;;  %v512_v58 = vrot.slane %v491_v54, 4  ;;  %v494_v0 = vld [vmem:[%s1605_s18 + $0x29] sm:$0x3f] }
  0x19   : > { %v1612_v13 = vld.sshfl [vmem:[#allocation1] sm:$0xff pattern:$0x73625140]  ;;  %v513_v59 = vrot.slane %v492_v57, 2  ;;  %v514_v60 = vrot.slane %v492_v57, 4  ;;  %v509_v62 = vrot.slane %v490_v53, 2 }
  0x1a   : > { %237 = vst [vmem:[#allocation1] ss:$4 sm:$0xff] %v200_v9  ;;  %v510_v63 = vrot.slane %v490_v53, 4  ;;  %v511_v1 = vrot.slane %v491_v54, 2  ;;  %v495_v4 = vld [vmem:[%s1605_s18 + $0x31] sm:$0x3f] }
  0x1b   : > { %238 = vst [vmem:[#allocation1 + $0x1] ss:$4 sm:$0xff] %v177_v8  ;;  %v517_v5 = vrot.slane %v494_v0, 2  ;;  %v518_v6 = vrot.slane %v494_v0, 4  ;;  %v519_v7 = vrot.slane %v495_v4, 2 }
  0x1c   : > { %239 = vst [vmem:[#allocation1 + $0x2] ss:$4 sm:$0xff] %v201_v11  ;;  %v493_v9 = vld [vmem:[%s1605_s18 + $0x21] sm:$0x3f]  ;;  %v496_v21 = vld [vmem:[%s1605_s18 + $0x39] sm:$0x3f] }
  0x1d   : > { %v1614_v16 = vld.sshfl [vmem:[#allocation1 + $0x20] sm:$0xff pattern:$0x73625140]  ;;  %240 = vst [vmem:[#allocation1 + $0x3] ss:$4 sm:$0xff] %v202_v12  ;;  %v516_v12 = vrot.slane %v493_v9, 4 }
  0x1e   : > { %241 = vst [vmem:[#allocation1 + $0x20] ss:$4 sm:$0xff] %v178_v10  ;;  %v515_v10 = vrot.slane %v493_v9, 2  ;;  %v761_v27 = vld [vmem:[%s1605_s18 + $0x1a] sm:$0x3f] }
  0x1f   : > { %242 = vst [vmem:[#allocation1 + $0x21] ss:$4 sm:$0xff] %v203_v14  ;;  %v783_v30 = vrot.slane %v761_v27, 4 }
  0x20   : > { %243 = vst [vmem:[#allocation1 + $0x22] ss:$4 sm:$0xff] %v204_v15  ;;  %v758_v15 = vld [vmem:[%s1605_s18 + $0x2] sm:$0x3f] }
  0x21   : > { %244 = vst [vmem:[#allocation1 + $0x23] ss:$4 sm:$0xff] %v179_v17  ;;  %v759_v17 = vld [vmem:[%s1605_s18 + $0xa] sm:$0x3f] }
  0x24   : > { %v245_v23 = vld.sshfl [vmem:[#allocation1] sm:$0xff pattern:$0x73625140] }
  0x25   : > { %247 = vst [vmem:[#allocation1] ss:$4 sm:$0xff] %v205_v19 }
  0x26   : > { %248 = vst [vmem:[#allocation1 + $0x1] ss:$4 sm:$0xff] %v206_v20 }
  0x27   : > { %249 = vst [vmem:[#allocation1 + $0x2] ss:$4 sm:$0xff] %v180_v18  ;;  %v777_v18 = vrot.slane %v758_v15, 4 }
  0x28   : > { %250 = vst [vmem:[#allocation1 + $0x3] ss:$4 sm:$0xff] %v207_v22  ;;  %v246_v28 = vld.sshfl [vmem:[#allocation1 + $0x20] sm:$0xff pattern:$0x73625140]  ;;  %v520_v22 = vrot.slane %v495_v4, 4 }
  0x29   : > { %251 = vst [vmem:[#allocation1 + $0x20] ss:$4 sm:$0xff] %v208_v25  ;;  %v522_v25 = vrot.slane %v496_v21, 4 }
  0x2a   : > { %252 = vst [vmem:[#allocation1 + $0x21] ss:$4 sm:$0xff] %v181_v24  ;;  %v521_v24 = vrot.slane %v496_v21, 2 }
  0x2b   : > { %253 = vst [vmem:[#allocation1 + $0x22] ss:$4 sm:$0xff] %v209_v26  ;;  %v760_v26 = vld [vmem:[%s1605_s18 + $0x12] sm:$0x3f] }
  0x2c   : > { %254 = vst [vmem:[#allocation1 + $0x23] ss:$4 sm:$0xff] %v210_v29  ;;  %v782_v29 = vrot.slane %v761_v27, 2  ;;  %v780_v35 = vrot.slane %v760_v26, 2 }
  0x2f   : > { %v255_v33 = vld.sshfl [vmem:[#allocation1] sm:$0xff pattern:$0x73625140] }
  0x30   : > { %258 = vst [vmem:[#allocation1] ss:$2 sm:$0xff] %v182_v32  ;;  %v778_v32 = vrot.slane %v759_v17, 2 }
  0x33   : > { %v256_v37 = vld.sshfl [vmem:[#allocation1 + $0x20] sm:$0xff pattern:$0x73625140] }
  0x34   : > { %269 = vst [vmem:[#allocation1 + $0x20] ss:$4 sm:$0xff] %v1627_v36 }
  0x35   : > { %271 = vst [vmem:[#allocation1 + $0x21] ss:$4 sm:$0xff] %v1629_v38 }
  0x36   : > { %273 = vst [vmem:[#allocation1 + $0x22] ss:$4 sm:$0xff] %v213_v39 }
  0x37   : > { %v260_v40 = vld.sshfl [vmem:[#allocation1 + $0x8] sm:$0xff pattern:$0x75316420]  ;;  %v259_v41 = vld.sshfl [vmem:[#allocation1] sm:$0xff pattern:$0x75316420] }
  0x38   : > { %1456 = vmatpush.msk.msra.mxu3 %vm329_vm3, %v260_v40  ;;  %1455 = vmatpush.msk.msra.mxu2 %vm329_vm3, %v259_v41  ;;  %261 = vst [vmem:[#allocation1] ss:$4 sm:$0xff] %v213_v39 }
  0x39   : > { %1420 = vmatmul.msk.f32.vlgmr.msra.gmra.mxu3 %vm316_vm4, %v246_v28  ;;  %1413 = vmatmul.msk.f32.vlgmr.msra.gmra.mxu2 %vm316_vm4, %v246_v28  ;;  %263 = vst [vmem:[#allocation1 + $0x1] ss:$4 sm:$0xff] %v1627_v36  ;;  %v781_v28 = vrot.slane %v760_v26, 4 }
  0x3a   : > { %265 = vst [vmem:[#allocation1 + $0x2] ss:$4 sm:$0xff] %v1629_v38  ;;  %1416 = vmatpush.msk.msra.mxu1 %vm329_vm3, %v260_v40  ;;  %1409 = vmatpush.msk.msra.mxu0 %vm329_vm3, %v259_v41 }
  0x3b   : > { %267 = vst [vmem:[#allocation1 + $0x3] ss:$4 sm:$0xff] %v213_v39  ;;  %1417 = vmatmul.msk.f32.vlgmr.msra.gmra.mxu1 %vm316_vm4, %v1612_v13  ;;  %1410 = vmatmul.msk.f32.vlgmr.msra.gmra.mxu0 %vm316_vm4, %v1612_v13  ;;  %v1423_v13 = vld [vmem:[%s2094_s1 + $0x8] sm:$0xff] }
  0x3c   : > { %275 = vst [vmem:[#allocation1 + $0x23] ss:$4 sm:$0xff] %v1627_v36 }
  0x41   : > { %1421 = vmatmul.msk.f32.gmra.mxu3 %vm316_vm4, %v255_v33  ;;  %1414 = vmatmul.msk.f32.gmra.mxu2 %vm316_vm4, %v255_v33  ;;  %v779_v33 = vrot.slane %v759_v17, 4 }
  0x42   : > { %v1649_v42 = vld.sshfl [vmem:[#allocation1] sm:$0xff pattern:$0x73625140]  ;;  %v1651_v43 = vld.sshfl [vmem:[#allocation1 + $0x8] sm:$0xff pattern:$0x73625140] }
  0x43   : > { %280 = vst [vmem:[#allocation1] ss:$4 sm:$0xff] %v1629_v38  ;;  %1418 = vmatmul.msk.f32.gmra.mxu1 %vm316_vm4, %v1614_v16  ;;  %1411 = vmatmul.msk.f32.gmra.mxu0 %vm316_vm4, %v1614_v16  ;;  %v1671_v46 = vld.sshfl [vmem:[#allocation1 + $0x20] sm:$0xff pattern:$0x73625140]  ;;  %v776_v16 = vrot.slane %v758_v15, 2 }
  0x44   : > { %281 = vst [vmem:[#allocation1 + $0x1] ss:$4 sm:$0xff] %v213_v39  ;;  %v1673_v47 = vld.sshfl [vmem:[#allocation1 + $0x28] sm:$0xff pattern:$0x73625140] }
  0x45   : > { %282 = vst [vmem:[#allocation1 + $0x2] ss:$4 sm:$0xff] %v1627_v36 }
  0x46   : > { %283 = vst [vmem:[#allocation1 + $0x3] ss:$4 sm:$0xff] %v1629_v38 }
  0x47   : > { %284 = vst [vmem:[#allocation1 + $0x20] ss:$4 sm:$0xff] %v213_v39 }
  0x48   : > { %285 = vst [vmem:[#allocation1 + $0x21] ss:$4 sm:$0xff] %v1627_v36 }
  0x49   : > { %1422 = vmatmul.msk.f32.gmra.mxu3 %vm316_vm4, %v256_v37  ;;  %1415 = vmatmul.msk.f32.gmra.mxu2 %vm316_vm4, %v256_v37  ;;  %286 = vst [vmem:[#allocation1 + $0x22] ss:$4 sm:$0xff] %v1629_v38  ;;  %v764_v37 = vld [vmem:[%s1605_s18 + $0x32] sm:$0x3f] }
  0x4a   : > { %287 = vst [vmem:[#allocation1 + $0x23] ss:$4 sm:$0xff] %v213_v39  ;;  %v788_v40 = vrot.slane %v764_v37, 2 }
  0x4b   : > { %1419 = vmatmul.msk.f32.gmra.mxu1 %vm316_vm4, %v245_v23  ;;  %1412 = vmatmul.msk.f32.gmra.mxu0 %vm316_vm4, %v245_v23 }
  0x4d   : > { %v1664_v44 = vld.sshfl [vmem:[#allocation1] sm:$0xff pattern:$0x73625140]  ;;  %v1666_v45 = vld.sshfl [vmem:[#allocation1 + $0x8] sm:$0xff pattern:$0x73625140] }
  0x4e   : > { %292 = vst [vmem:[#allocation1] ss:$4 sm:$0xff] %v1627_v36 }
  0x4f   : > { %293 = vst [vmem:[#allocation1 + $0x1] ss:$4 sm:$0xff] %v1629_v38 }
  0x50   : > { %294 = vst [vmem:[#allocation1 + $0x2] ss:$4 sm:$0xff] %v213_v39 }
  0x51   : > { %295 = vst [vmem:[#allocation1 + $0x3] ss:$4 sm:$0xff] %v1627_v36  ;;  %v1684_v55 = vld.sshfl [vmem:[#allocation1 + $0x20] sm:$0xff pattern:$0x73625140] }
  0x52   : > { %v1686_v56 = vld.sshfl [vmem:[#allocation1 + $0x28] sm:$0xff pattern:$0x73625140] }
  0x53   : > { %296 = vst [vmem:[#allocation1 + $0x20] ss:$4 sm:$0xff] %v1629_v38 }
  0x54   : > { %297 = vst [vmem:[#allocation1 + $0x21] ss:$4 sm:$0xff] %v213_v39 }
  0x55   : > { %298 = vst [vmem:[#allocation1 + $0x22] ss:$4 sm:$0xff] %v1627_v36  ;;  %v763_v36 = vld [vmem:[%s1605_s18 + $0x2a] sm:$0x3f] }
  0x56   : > { %299 = vst [vmem:[#allocation1 + $0x23] ss:$4 sm:$0xff] %v1629_v38  ;;  %v786_v38 = vrot.slane %v763_v36, 2  ;;  %v787_v39 = vrot.slane %v763_v36, 4 }
  0x58   : > { %v1678_v51 = vld.sshfl [vmem:[#allocation1] sm:$0xff pattern:$0x73625140]  ;;  %v1680_v52 = vld.sshfl [vmem:[#allocation1 + $0x8] sm:$0xff pattern:$0x73625140] }
  0x59   : > { %523 = vst [vmem:[#allocation1] ss:$4 sm:$0xff] %v489_v48  ;;  %v762_v48 = vld [vmem:[%s1605_s18 + $0x22] sm:$0x3f] }
  0x5a   : > { %525 = vst [vmem:[#allocation1 + $0x1] ss:$4 sm:$0xff] %v507_v49  ;;  %v784_v49 = vrot.slane %v762_v48, 2 }
  0x5b   : > { %527 = vst [vmem:[#allocation1 + $0x2] ss:$4 sm:$0xff] %v508_v50 }
  0x5c   : > { %529 = vst [vmem:[#allocation1 + $0x3] ss:$4 sm:$0xff] %v490_v53  ;;  %v785_v53 = vrot.slane %v762_v48, 4 }
  0x5d   : > { %v1693_v2 = vld.sshfl [vmem:[#allocation1 + $0x20] sm:$0xff pattern:$0x73625140]  ;;  %v1695_v3 = vld.sshfl [vmem:[#allocation1 + $0x28] sm:$0xff pattern:$0x73625140] }
  0x5e   : > { %531 = vst [vmem:[#allocation1 + $0x20] ss:$4 sm:$0xff] %v509_v62  ;;  %v789_v62 = vrot.slane %v764_v37, 4 }
  0x5f   : > { %533 = vst [vmem:[#allocation1 + $0x21] ss:$4 sm:$0xff] %v510_v63 }
  0x60   : > { %535 = vst [vmem:[#allocation1 + $0x22] ss:$4 sm:$0xff] %v491_v54  ;;  %v1438_v54 = vld [vmem:[%s2094_s1 + $0x10] sm:$0xff] }
  0x61   : > { %537 = vst [vmem:[#allocation1 + $0x23] ss:$4 sm:$0xff] %v511_v1 }
  0x63   : > { %v538_v61 = vld.sshfl [vmem:[#allocation1] sm:$0xff pattern:$0x73625140] }
  0x64   : > { %540 = vst [vmem:[#allocation1] ss:$4 sm:$0xff] %v512_v58 }
  0x65   : > { %541 = vst [vmem:[#allocation1 + $0x1] ss:$4 sm:$0xff] %v492_v57 }
  0x66   : > { %542 = vst [vmem:[#allocation1 + $0x2] ss:$4 sm:$0xff] %v513_v59  ;;  %v765_v59 = vld [vmem:[%s1605_s18 + $0x3a] sm:$0x3f] }
  0x67   : > { %543 = vst [vmem:[#allocation1 + $0x3] ss:$4 sm:$0xff] %v514_v60  ;;  %v790_v63 = vrot.slane %v765_v59, 2 }
  0x68   : > { %v539_v11 = vld.sshfl [vmem:[#allocation1 + $0x20] sm:$0xff pattern:$0x73625140] }
  0x69   : > { %547 = vst [vmem:[#allocation1 + $0x23] ss:$4 sm:$0xff] %v494_v0  ;;  %v791_v0 = vrot.slane %v765_v59, 4 }
  0x6a   : > { %544 = vst [vmem:[#allocation1 + $0x20] ss:$4 sm:$0xff] %v493_v9 }
  0x6b   : > { %545 = vst [vmem:[#allocation1 + $0x21] ss:$4 sm:$0xff] %v515_v10 }
  0x6c   : > { %546 = vst [vmem:[#allocation1 + $0x22] ss:$4 sm:$0xff] %v516_v12 }
  0x6e   : > { %v548_v8 = vld.sshfl [vmem:[#allocation1] sm:$0xff pattern:$0x73625140] }
  0x6f   : > { %550 = vst [vmem:[#allocation1] ss:$4 sm:$0xff] %v517_v5 }
  0x70   : > { %551 = vst [vmem:[#allocation1 + $0x1] ss:$4 sm:$0xff] %v518_v6 }
  0x71   : > { %552 = vst [vmem:[#allocation1 + $0x2] ss:$4 sm:$0xff] %v495_v4 }
  0x72   : > { %553 = vst [vmem:[#allocation1 + $0x3] ss:$4 sm:$0xff] %v519_v7 }
  0x73   : > { %v549_v23 = vld.sshfl [vmem:[#allocation1 + $0x20] sm:$0xff pattern:$0x73625140] }
  0x74   : > { %554 = vst [vmem:[#allocation1 + $0x20] ss:$4 sm:$0xff] %v520_v22 }
  0x75   : > { %555 = vst [vmem:[#allocation1 + $0x21] ss:$4 sm:$0xff] %v496_v21 }
  0x76   : > { %556 = vst [vmem:[#allocation1 + $0x22] ss:$4 sm:$0xff] %v521_v24 }
  0x77   : > { %557 = vst [vmem:[#allocation1 + $0x23] ss:$4 sm:$0xff] %v522_v25 }
  0x79   : > { %v1702_v14 = vld.sshfl [vmem:[#allocation1] sm:$0xff pattern:$0x73625140] }
  0x7a   : > { %561 = vst [vmem:[#allocation1] ss:$2 sm:$0xff] %v1423_v13 }
  0x7e   : > { %v559_v34 = vld.sshfl [vmem:[#allocation1 + $0x20] sm:$0xff pattern:$0x73625140] }
  0x7f   : > { %800 = vst [vmem:[#allocation1 + $0x20] ss:$4 sm:$0xff] %v778_v32 }
  0x80   : > { %802 = vst [vmem:[#allocation1 + $0x21] ss:$4 sm:$0xff] %v779_v33 }
  0x81   : > { %v563_v19 = vld.sshfl [vmem:[#allocation1 + $0x8] sm:$0xff pattern:$0x75316420]  ;;  %v562_v20 = vld.sshfl [vmem:[#allocation1] sm:$0xff pattern:$0x75316420] }
  0x82   : > { %1431 = vmatpush.msk.msrb.mxu3 %vm329_vm3, %v563_v19  ;;  %1424 = vmatpush.msk.msrb.mxu2 %vm329_vm3, %v562_v20  ;;  %792 = vst [vmem:[#allocation1] ss:$4 sm:$0xff] %v758_v15 }
  0x83   : > { %1432 = vmatmul.msk.f32.vlgmr.msrb.gmra.mxu3 %vm316_vm4, %v538_v61  ;;  %1425 = vmatmul.msk.f32.vlgmr.msrb.gmra.mxu2 %vm316_vm4, %v538_v61  ;;  %794 = vst [vmem:[#allocation1 + $0x1] ss:$4 sm:$0xff] %v776_v16 }
  0x84   : > { %796 = vst [vmem:[#allocation1 + $0x2] ss:$4 sm:$0xff] %v777_v18 }
  0x85   : > { %798 = vst [vmem:[#allocation1 + $0x3] ss:$4 sm:$0xff] %v759_v17 }
  0x86   : > { %804 = vst [vmem:[#allocation1 + $0x22] ss:$4 sm:$0xff] %v760_v26 }
  0x87   : > { %806 = vst [vmem:[#allocation1 + $0x23] ss:$4 sm:$0xff] %v780_v35 }
  0x8b   : > { %1433 = vmatmul.msk.f32.gmra.mxu3 %vm316_vm4, %v539_v11  ;;  %1426 = vmatmul.msk.f32.gmra.mxu2 %vm316_vm4, %v539_v11 }
  0x8c   : > { %v807_v31 = vld.sshfl [vmem:[#allocation1] sm:$0xff pattern:$0x73625140] }
  0x8d   : > { %809 = vst [vmem:[#allocation1] ss:$4 sm:$0xff] %v781_v28 }
  0x8e   : > { %810 = vst [vmem:[#allocation1 + $0x1] ss:$4 sm:$0xff] %v761_v27  ;;  %v808_v50 = vld.sshfl [vmem:[#allocation1 + $0x20] sm:$0xff pattern:$0x73625140] }
  0x8f   : > { %811 = vst [vmem:[#allocation1 + $0x2] ss:$4 sm:$0xff] %v782_v29 }
  0x90   : > { %812 = vst [vmem:[#allocation1 + $0x3] ss:$4 sm:$0xff] %v783_v30 }
  0x91   : > { %816 = vst [vmem:[#allocation1 + $0x23] ss:$4 sm:$0xff] %v763_v36 }
  0x92   : > { %813 = vst [vmem:[#allocation1 + $0x20] ss:$4 sm:$0xff] %v762_v48 }
  0x93   : > { %1434 = vmatmul.msk.f32.gmra.mxu3 %vm316_vm4, %v548_v8  ;;  %1427 = vmatmul.msk.f32.gmra.mxu2 %vm316_vm4, %v548_v8  ;;  %814 = vst [vmem:[#allocation1 + $0x21] ss:$4 sm:$0xff] %v784_v49 }
  0x94   : > { %815 = vst [vmem:[#allocation1 + $0x22] ss:$4 sm:$0xff] %v785_v53 }
  0x97   : > { %v817_v41 = vld.sshfl [vmem:[#allocation1] sm:$0xff pattern:$0x73625140] }
  0x98   : > { %819 = vst [vmem:[#allocation1] ss:$4 sm:$0xff] %v786_v38 }
  0x99   : > { %820 = vst [vmem:[#allocation1 + $0x1] ss:$4 sm:$0xff] %v787_v39 }
  0x9a   : > { %821 = vst [vmem:[#allocation1 + $0x2] ss:$4 sm:$0xff] %v764_v37 }
  0x9b   : > { %1435 = vmatmul.msk.f32.gmra.mxu3 %vm316_vm4, %v549_v23  ;;  %1428 = vmatmul.msk.f32.gmra.mxu2 %vm316_vm4, %v549_v23  ;;  %822 = vst [vmem:[#allocation1 + $0x3] ss:$4 sm:$0xff] %v788_v40  ;;  %v818_v58 = vld.sshfl [vmem:[#allocation1 + $0x20] sm:$0xff pattern:$0x73625140] }
  0x9c   : > { %824 = vst [vmem:[#allocation1 + $0x21] ss:$4 sm:$0xff] %v765_v59 }
  0x9d   : > { %823 = vst [vmem:[#allocation1 + $0x20] ss:$4 sm:$0xff] %v789_v62 }
  0x9e   : > { %825 = vst [vmem:[#allocation1 + $0x22] ss:$4 sm:$0xff] %v790_v63 }
  0x9f   : > { %826 = vst [vmem:[#allocation1 + $0x23] ss:$4 sm:$0xff] %v791_v0 }
  0xa2   : > { %v827_v57 = vld.sshfl [vmem:[#allocation1] sm:$0xff pattern:$0x73625140] }
  0xa3   : > { %830 = vst [vmem:[#allocation1] ss:$2 sm:$0xff] %v1438_v54  ;;  %1436 = vmatmul.msk.f32.gmra.mxu3 %vm316_vm4, %v1702_v14  ;;  %1429 = vmatmul.msk.f32.gmra.mxu2 %vm316_vm4, %v1702_v14 }
  0xa6   : > { %v828_v1 = vld.sshfl [vmem:[#allocation1 + $0x20] sm:$0xff pattern:$0x73625140] }
  0xaa   : > { %v832_v60 = vld.sshfl [vmem:[#allocation1 + $0x8] sm:$0xff pattern:$0x75316420]  ;;  %v831_v61 = vld.sshfl [vmem:[#allocation1] sm:$0xff pattern:$0x75316420] }
  0xab   : > { %1446 = vmatpush.msk.msrb.mxu1 %vm329_vm3, %v832_v60  ;;  %1439 = vmatpush.msk.msrb.mxu0 %vm329_vm3, %v831_v61 }
  0xac   : > { %1447 = vmatmul.msk.f32.vlgmr.msrb.gmra.mxu1 %vm316_vm4, %v807_v31  ;;  %1440 = vmatmul.msk.f32.vlgmr.msrb.gmra.mxu0 %vm316_vm4, %v807_v31 }
  0xad   : > { %1437 = vmatmul.msk.f32.gmra.mxu3 %vm316_vm4, %v559_v34  ;;  %1430 = vmatmul.msk.f32.gmra.mxu2 %vm316_vm4, %v559_v34 }
  0xb4   : > { %1448 = vmatmul.msk.f32.gmra.mxu1 %vm316_vm4, %v808_v50  ;;  %1441 = vmatmul.msk.f32.gmra.mxu0 %vm316_vm4, %v808_v50 }
  0xb8   : > { %v386_v8 = vpop.f32.mrf.mxu1  ;;  %v351_v11 = vpop.f32.mrf.mxu0 }
  0xb9   : > { %v387_v20 = vadd.f32 %v386_v8, %v1651_v43 }
  0xbc   : > { %1449 = vmatmul.msk.f32.gmra.mxu1 %vm316_vm4, %v817_v41  ;;  %1442 = vmatmul.msk.f32.gmra.mxu0 %vm316_vm4, %v817_v41  ;;  %v395_v4 = vpop.f32.mrf.mxu3  ;;  %v360_v5 = vpop.f32.mrf.mxu2 }
  0xbd   : > { %v396_v15 = vadd.f32 %v395_v4, %v1686_v56  ;;  %v361_v19 = vadd.f32 %v360_v5, %v1684_v55  ;;  %v352_v55 = vadd.f32 %v351_v11, %v1649_v42 }
  0xbf   : > { %v419_v18 = vrot.slane %v396_v15, 6 }
  0xc0   : > { %v389_v12 = vpop.f32.mrf.mxu1  ;;  %v354_v16 = vpop.f32.mrf.mxu0 }
  0xc1   : > { %v390_v25 = vadd.f32 %v389_v12, %v1673_v47  ;;  %v1759_v26 = vsel %vm214_vm0, %v361_v19, %v419_v18  ;;  %v1763_v43 = vsel %vm217_vm1, %v361_v19, %v419_v18  ;;  %v1766_v27 = vsel %vm427_vm5, %v419_v18, %v361_v19 }
  0xc2   : > { %v355_v29 = vadd.f32 %v354_v16, %v1671_v46  ;;  %v446_v31 = vrot.slane %v1759_v26, 2  ;;  %v450_v34 = vrot.slane %v1766_v27, 6 }
  0xc3   : > { %v417_v28 = vrot.slane %v390_v25, 6 }
  0xc4   : > { %1450 = vmatmul.msk.f32.gmra.mxu1 %vm316_vm4, %v818_v58  ;;  %1443 = vmatmul.msk.f32.gmra.mxu0 %vm316_vm4, %v818_v58  ;;  %v398_v6 = vpop.f32.mrf.mxu3  ;;  %v363_v7 = vpop.f32.mrf.mxu2 }
  0xc5   : > { %v399_v17 = vadd.f32 %v398_v6, %v1680_v52  ;;  %v1755_v24 = vadd.f32 %v363_v7, %v1678_v51  ;;  %v416_v52 = vrot.slane %v387_v20, 6  ;;  %v1799_v50 = vsel %vm214_vm0, %v355_v29, %v417_v28 }
  0xc6   : > { %v433_v61 = vsel %vm217_vm1, %v355_v29, %v417_v28  ;;  %v430_v62 = vsel %vm212_vm2, %v355_v29, %v417_v28  ;;  %v432_v63 = vrot.slane %v1799_v50, 2  ;;  %v435_v0 = vsel %vm427_vm5, %v417_v28, %v355_v29 }
  0xc7   : > { %v1752_v23 = vrot.slane %v399_v17, 6  ;;  %v423_v35 = vsel %vm214_vm0, %v352_v55, %v416_v52  ;;  %v425_v38 = vsel %vm217_vm1, %v352_v55, %v416_v52  ;;  %v428_v39 = vsel %vm427_vm5, %v416_v52, %v352_v55 }
  0xc8   : > { %v392_v56 = vpop.f32.mrf.mxu1  ;;  %v357_v30 = vpop.f32.mrf.mxu0  ;;  %v424_v58 = vrot.slane %v423_v35, 2  ;;  %v426_v59 = vrot.slane %v425_v38, 4  ;;  %v429_v60 = vrot.slane %v428_v39, 6  ;;  %v436_v11 = vrot.slane %v435_v0, 6 }
  0xc9   : > { %v1771_v51 = vsel %vm214_vm0, %v1755_v24, %v1752_v23  ;;  %v393_v47 = vadd.f32 %v392_v56, %v1666_v45  ;;  %v1779_v42 = vsel %vm217_vm1, %v1755_v24, %v1752_v23  ;;  %v1784_v32 = vsel %vm427_vm5, %v1752_v23, %v1755_v24 }
  0xca   : > { %v448_v45 = vrot.slane %v1763_v43, 4  ;;  %v453_v46 = vrot.slane %v1771_v51, 2  ;;  %v358_v41 = vadd.f32 %v357_v30, %v1664_v44  ;;  %v457_v48 = vrot.slane %v1784_v32, 6 }
  0xcb   : > { %v418_v40 = vrot.slane %v393_v47, 6  ;;  %v1805_v44 = vsel %vm212_vm2, %v361_v19, %v419_v18 }
  0xcc   : > { %1451 = vmatmul.msk.f32.gmra.mxu1 %vm316_vm4, %v827_v57  ;;  %1444 = vmatmul.msk.f32.gmra.mxu0 %vm316_vm4, %v827_v57  ;;  %v401_v9 = vpop.f32.mrf.mxu3  ;;  %v366_v10 = vpop.f32.mrf.mxu2  ;;  %v422_v57 = vsel %vm212_vm2, %v352_v55, %v416_v52  ;;  %v1821_v55 = vsel %vm212_vm2, %v1755_v24, %v1752_v23 }
  0xcd   : > { %v402_v33 = vadd.f32 %v401_v9, %v1695_v3  ;;  %v455_v3 = vrot.slane %v1779_v42, 4  ;;  %v367_v54 = vadd.f32 %v366_v10, %v1693_v2  ;;  %v440_v5 = vsel %vm217_vm1, %v358_v41, %v418_v40 }
  0xce   : > { %v442_v6 = vsel %vm427_vm5, %v418_v40, %v358_v41  ;;  %v434_v10 = vrot.slane %v433_v61, 4  ;;  %v441_v20 = vrot.slane %v440_v5, 4 }
  0xcf   : > { %v421_v53 = vrot.slane %v402_v33, 6  ;;  %v443_v25 = vrot.slane %v442_v6, 6 }
  0xd1   : > { %v1833_v29 = vsel %vm214_vm0, %v367_v54, %v421_v53  ;;  %v1842_v33 = vsel %vm217_vm1, %v367_v54, %v421_v53  ;;  %v1845_v39 = vsel %vm427_vm5, %v421_v53, %v367_v54 }
  0xd4   : > { %1452 = vmatmul.msk.f32.gmra.mxu1 %vm316_vm4, %v828_v1  ;;  %1445 = vmatmul.msk.f32.gmra.mxu0 %vm316_vm4, %v828_v1  ;;  %v438_v1 = vsel %vm214_vm0, %v358_v41, %v418_v40 }
  0xd5   : > { %v439_v15 = vrot.slane %v438_v1, 2 }
 0x106   : > { %v632_v13 = vpop.f32.mrf.mxu3  ;;  %v597_v14 = vpop.f32.mrf.mxu2 }
 0x107   : > { %v662_v49 = vrot.slane %v632_v13, 6  ;;  %v437_v13 = vsel %vm212_vm2, %v358_v41, %v418_v40 }
 0x109   : > { %v669_v2 = vsel %vm214_vm0, %v597_v14, %v662_v49  ;;  %v671_v4 = vsel %vm217_vm1, %v597_v14, %v662_v49  ;;  %v668_v7 = vsel %vm212_vm2, %v597_v14, %v662_v49  ;;  %v673_v8 = vsel %vm427_vm5, %v662_v49, %v597_v14 }
 0x10a   : > { %v670_v18 = vrot.slane %v669_v2, 2  ;;  %v672_v19 = vrot.slane %v671_v4, 4  ;;  %v674_v56 = vrot.slane %v673_v8, 6  ;;  %v734_v52 = vadd.f32 %v668_v7, %v422_v57 }
 0x10b   : > { %v1824_v14 = vsel %vm212_vm2, %v367_v54, %v421_v53  ;;  %v464_v53 = vrot.slane %v1845_v39, 6 }
 0x10c   : > { %v736_v38 = vadd.f32 %v672_v19, %v426_v59  ;;  %v737_v1 = vadd.f32 %v674_v56, %v429_v60  ;;  %v462_v59 = vrot.slane %v1842_v33, 4 }
 0x10e   : > { %v635_v21 = vpop.f32.mrf.mxu3  ;;  %v1750_v22 = vpop.f32.mrf.mxu2 }
 0x10f   : > { %v663_v9 = vrot.slane %v635_v21, 6 }
 0x111   : > { %v676_v21 = vsel %vm214_vm0, %v1750_v22, %v663_v9  ;;  %v678_v47 = vsel %vm217_vm1, %v1750_v22, %v663_v9  ;;  %v680_v28 = vsel %vm427_vm5, %v663_v9, %v1750_v22  ;;  %v675_v40 = vsel %vm212_vm2, %v1750_v22, %v663_v9 }
 0x112   : > { %v677_v41 = vrot.slane %v676_v21, 2  ;;  %v679_v49 = vrot.slane %v678_v47, 4  ;;  %v681_v50 = vrot.slane %v680_v28, 6  ;;  %v1856_v6 = vadd.f32 %v675_v40, %v430_v62 }
 0x114   : > { %v1859_v8 = vadd.f32 %v677_v41, %v432_v63  ;;  %v1863_v9 = vadd.f32 %v681_v50, %v436_v11 }
 0x116   : > { %v638_v36 = vpop.f32.mrf.mxu3  ;;  %v1791_v37 = vpop.f32.mrf.mxu2 }
 0x117   : > { %v664_v12 = vrot.slane %v638_v36, 6  ;;  %v735_v36 = vadd.f32 %v670_v18, %v424_v58  ;;  %v460_v58 = vrot.slane %v1833_v29, 2 }
 0x119   : > { %v683_v30 = vsel %vm214_vm0, %v1791_v37, %v664_v12  ;;  %v685_v23 = vsel %vm217_vm1, %v1791_v37, %v664_v12  ;;  %v687_v24 = vsel %vm427_vm5, %v664_v12, %v1791_v37  ;;  %v682_v2 = vsel %vm212_vm2, %v1791_v37, %v664_v12 }
 0x11a   : > { %v684_v57 = vrot.slane %v683_v30, 2  ;;  %v686_v61 = vrot.slane %v685_v23, 4  ;;  %v688_v0 = vrot.slane %v687_v24, 6  ;;  %v1861_v37 = vadd.f32 %v679_v49, %v434_v10 }
 0x11b   : > { %v1865_v18 = vadd.f32 %v682_v2, %v437_v13 }
 0x11c   : > { %v1867_v19 = vadd.f32 %v684_v57, %v439_v15  ;;  %v1869_v56 = vadd.f32 %v686_v61, %v441_v20  ;;  %v1871_v21 = vadd.f32 %v688_v0, %v443_v25 }
 0x11e   : > { %v641_v16 = vpop.f32.mrf.mxu3  ;;  %v606_v17 = vpop.f32.mrf.mxu2 }
 0x11f   : > { %v665_v35 = vrot.slane %v641_v16, 6 }
 0x121   : > { %v690_v54 = vsel %vm214_vm0, %v606_v17, %v665_v35  ;;  %v692_v22 = vsel %vm217_vm1, %v606_v17, %v665_v35  ;;  %v694_v7 = vsel %vm427_vm5, %v665_v35, %v606_v17  ;;  %v689_v47 = vsel %vm212_vm2, %v606_v17, %v665_v35 }
 0x122   : > { %v691_v28 = vrot.slane %v690_v54, 2  ;;  %v693_v63 = vrot.slane %v692_v22, 4  ;;  %v695_v30 = vrot.slane %v694_v7, 6  ;;  %v1886_v41 = vadd.f32 %v689_v47, %v1805_v44 }
 0x124   : > { %v1890_v49 = vadd.f32 %v691_v28, %v446_v31  ;;  %v1906_v26 = vadd.f32 %v695_v30, %v450_v34 }
 0x126   : > { %v644_v4 = vpop.f32.mrf.mxu3  ;;  %v609_v60 = vpop.f32.mrf.mxu2 }
 0x127   : > { %v666_v5 = vrot.slane %v644_v4, 6 }
 0x129   : > { %v901_v12 = vpop.f32.mrf.mxu1  ;;  %v866_v16 = vpop.f32.mrf.mxu0  ;;  %v697_v10 = vsel %vm214_vm0, %v609_v60, %v666_v5  ;;  %v699_v11 = vsel %vm217_vm1, %v609_v60, %v666_v5  ;;  %v1877_v23 = vsel %vm427_vm5, %v666_v5, %v609_v60  ;;  %v696_v50 = vsel %vm212_vm2, %v609_v60, %v666_v5 }
 0x12a   : > { %v931_v62 = vrot.slane %v901_v12, 6  ;;  %v698_v57 = vrot.slane %v697_v10, 2  ;;  %v700_v31 = vrot.slane %v699_v11, 4  ;;  %v702_v44 = vrot.slane %v1877_v23, 6 }
 0x12c   : > { %v937_v13 = vsel %vm212_vm2, %v866_v16, %v931_v62  ;;  %v938_v15 = vsel %vm214_vm0, %v866_v16, %v931_v62  ;;  %v940_v20 = vsel %vm217_vm1, %v866_v16, %v931_v62  ;;  %v942_v25 = vsel %vm427_vm5, %v931_v62, %v866_v16 }
 0x12d   : > { %v939_v24 = vrot.slane %v938_v15, 2  ;;  %v941_v17 = vrot.slane %v940_v20, 4  ;;  %v943_v35 = vrot.slane %v942_v25, 6  ;;  %v1883_v40 = vadd.f32 %v937_v13, %v734_v52 }
 0x12e   : > { %v1902_v52 = vadd.f32 %v693_v63, %v448_v45  ;;  %v1913_v45 = vadd.f32 %v696_v50, %v1821_v55  ;;  %v1917_v27 = vadd.f32 %v698_v57, %v453_v46  ;;  %v1928_v20 = vadd.f32 %v700_v31, %v455_v3 }
 0x12f   : > { %v1893_v61 = vadd.f32 %v939_v24, %v735_v36  ;;  %v1895_v0 = vadd.f32 %v941_v17, %v736_v38  ;;  %v1897_v2 = vadd.f32 %v943_v35, %v737_v1  ;;  %v1051_v4 = vrot.slane %v1883_v40, 2 }
 0x130   : > { %v647_v54 = vpop.f32.mrf.mxu3  ;;  %v612_v10 = vpop.f32.mrf.mxu2 }
 0x131   : > { %v1052_v36 = vrot.slane %v1893_v61, 2  ;;  %v1053_v38 = vrot.slane %v1895_v0, 2  ;;  %v1054_v1 = vrot.slane %v1897_v2, 2  ;;  %v1099_v22 = vsub.f32 0.0, %v1051_v4  ;;  %v904_v5 = vpop.f32.mrf.mxu1  ;;  %v869_v7 = vpop.f32.mrf.mxu0 }
 0x132   : > { %v932_v43 = vrot.slane %v904_v5, 6  ;;  %v667_v34 = vrot.slane %v647_v54, 6 }
 0x133   : > { %v1100_v60 = vsub.f32 0.0, %v1052_v36  ;;  %v1101_v12 = vsub.f32 0.0, %v1053_v38  ;;  %v1102_v16 = vsub.f32 0.0, %v1054_v1  ;;  %v1123_v62 = vmul.f32 1.442695, %v1099_v22 }
 0x134   : > { %v944_v47 = vsel %vm212_vm2, %v869_v7, %v932_v43  ;;  %v945_v28 = vsel %vm214_vm0, %v869_v7, %v932_v43  ;;  %v947_v63 = vsel %vm217_vm1, %v869_v7, %v932_v43  ;;  %v949_v30 = vsel %vm427_vm5, %v932_v43, %v869_v7 }
 0x135   : > { %1465 = vpow2.f32 %v1123_v62  ;;  %v1125_v55 = vmul.f32 1.442695, %v1100_v60  ;;  %v1127_v11 = vmul.f32 1.442695, %v1101_v12  ;;  %v1129_v51 = vmul.f32 1.442695, %v1102_v16 }
 0x136   : > { %v946_v46 = vrot.slane %v945_v28, 2  ;;  %v948_v23 = vrot.slane %v947_v63, 4  ;;  %v950_v13 = vrot.slane %v949_v30, 6  ;;  %v1924_v15 = vadd.f32 %v944_v47, %v1856_v6 }
 0x137   : > { %1467 = vpow2.f32 %v1125_v55  ;;  %v704_v25 = vsel %vm214_vm0, %v612_v10, %v667_v34  ;;  %v706_v24 = vsel %vm217_vm1, %v612_v10, %v667_v34  ;;  %v703_v3 = vsel %vm212_vm2, %v612_v10, %v667_v34 }
 0x138   : > { %1469 = vpow2.f32 %v1127_v11  ;;  %v1933_v17 = vadd.f32 %v946_v46, %v1859_v8  ;;  %v1936_v35 = vadd.f32 %v948_v23, %v1861_v37  ;;  %v1939_v50 = vadd.f32 %v950_v13, %v1863_v9 }
 0x139   : > { %1471 = vpow2.f32 %v1129_v51  ;;  %v1055_v6 = vrot.slane %v1924_v15, 2  ;;  %v907_v42 = vpop.f32.mrf.mxu1  ;;  %v705_v57 = vrot.slane %v704_v25, 2  ;;  %v872_v4 = vpop.f32.mrf.mxu0  ;;  %v1948_v9 = vadd.f32 %v702_v44, %v457_v48 }
 0x13a   : > { %v1056_v31 = vrot.slane %v1933_v17, 2  ;;  %v1057_v54 = vrot.slane %v1936_v35, 2  ;;  %v1058_v8 = vrot.slane %v1939_v50, 2  ;;  %v933_v36 = vrot.slane %v907_v42, 6 }
 0x13b   : > { %v1466_v37 = vpop.eup %1465  ;;  %v1103_v38 = vsub.f32 0.0, %v1055_v6  ;;  %v707_v1 = vrot.slane %v706_v24, 4  ;;  %v1951_v22 = vsel %vm427_vm5, %v667_v34, %v612_v10  ;;  %v1955_v47 = vadd.f32 %v703_v3, %v1824_v14 }
 0x13c   : > { %v1171_v5 = vadd.f32 1.0, %v1466_v37  ;;  %v1104_v7 = vsub.f32 0.0, %v1056_v31  ;;  %v1105_v43 = vsub.f32 0.0, %v1057_v54  ;;  %v1106_v60 = vsub.f32 0.0, %v1058_v8 }
 0x13d   : > { %v1468_v12 = vpop.eup %1467  ;;  %v1131_v16 = vmul.f32 1.442695, %v1103_v38  ;;  %v709_v62 = vrot.slane %v1951_v22, 6  ;;  %v1959_v32 = vadd.f32 %v705_v57, %v460_v58  ;;  %v951_v28 = vsel %vm212_vm2, %v872_v4, %v933_v36 }
 0x13e   : > { %v1470_v48 = vpop.eup %1469  ;;  %v1172_v44 = vadd.f32 1.0, %v1468_v12  ;;  %1473 = vrcp.f32 %v1171_v5  ;;  %v1133_v34 = vmul.f32 1.442695, %v1104_v7  ;;  %v1135_v10 = vmul.f32 1.442695, %v1105_v43 }
 0x13f   : > { %v1472_v63 = vpop.eup %1471  ;;  %v1173_v30 = vadd.f32 1.0, %v1470_v48  ;;  %1475 = vpow2.f32 %v1131_v16  ;;  %v1137_v55 = vmul.f32 1.442695, %v1106_v60  ;;  %v952_v14 = vsel %vm214_vm0, %v872_v4, %v933_v36 }
 0x140   : > { %v1174_v11 = vadd.f32 1.0, %v1472_v63  ;;  %1477 = vrcp.f32 %v1172_v44  ;;  %v954_v51 = vsel %vm217_vm1, %v872_v4, %v933_v36  ;;  %v953_v29 = vrot.slane %v952_v14, 2 }
 0x141   : > { %1479 = vrcp.f32 %v1173_v30  ;;  %v955_v58 = vrot.slane %v954_v51, 4  ;;  %v956_v46 = vsel %vm427_vm5, %v933_v36, %v872_v4  ;;  %v910_v23 = vpop.f32.mrf.mxu1  ;;  %v875_v13 = vpop.f32.mrf.mxu0  ;;  %v1966_v24 = vadd.f32 %v951_v28, %v1865_v18 }
 0x142   : > { %1481 = vrcp.f32 %v1174_v11  ;;  %v957_v25 = vrot.slane %v956_v46, 6  ;;  %v934_v6 = vrot.slane %v910_v23, 6  ;;  %v1970_v42 = vadd.f32 %v707_v1, %v462_v59 }
 0x143   : > { %1483 = vpow2.f32 %v1133_v34  ;;  %v1973_v3 = vadd.f32 %v953_v29, %v1867_v19  ;;  %v1976_v57 = vadd.f32 %v955_v58, %v1869_v56  ;;  %v1059_v18 = vrot.slane %v1966_v24, 2 }
 0x144   : > { %v1474_v4 = vpop.eup %1473  ;;  %1485 = vpow2.f32 %v1135_v10  ;;  %v1979_v31 = vadd.f32 %v957_v25, %v1871_v21  ;;  %v958_v54 = vsel %vm212_vm2, %v875_v13, %v934_v6  ;;  %v959_v21 = vsel %vm214_vm0, %v875_v13, %v934_v6 }
 0x145   : > { %v1476_v8 = vpop.eup %1475  ;;  %v1219_v33 = vadd.f32 %v1474_v4, %v1883_v40  ;;  %1487 = vpow2.f32 %v1137_v55  ;;  %v1060_v59 = vrot.slane %v1973_v3, 2  ;;  %v1061_v19 = vrot.slane %v1976_v57, 2 }
 0x146   : > { %v1478_v36 = vpop.eup %1477  ;;  %v1175_v56 = vadd.f32 1.0, %v1476_v8  ;;  %v1062_v37 = vrot.slane %v1979_v31, 2  ;;  %v1107_v38 = vsub.f32 0.0, %v1059_v18  ;;  %v960_v30 = vrot.slane %v959_v21, 2 }
 0x147   : > { %v1480_v1 = vpop.eup %1479  ;;  %v1220_v5 = vadd.f32 %v1478_v36, %v1893_v61  ;;  %v1243_v7 = vmax.f32 %v1219_v33, 0.0  ;;  %v1108_v43 = vsub.f32 0.0, %v1060_v59  ;;  %v1109_v60 = vsub.f32 0.0, %v1061_v19 }
 0x148   : > { %v1482_v12 = vpop.eup %1481  ;;  %v1221_v40 = vadd.f32 %v1480_v1, %v1895_v0  ;;  %1489 = vrcp.f32 %v1175_v56  ;;  %v1110_v16 = vsub.f32 0.0, %v1062_v37  ;;  %v1139_v48 = vmul.f32 1.442695, %v1107_v38 }
 0x149   : > { %v1484_v44 = vpop.eup %1483  ;;  %v1222_v34 = vadd.f32 %v1482_v12, %v1897_v2  ;;  %v1244_v28 = vmax.f32 %v1220_v5, 0.0  ;;  %1291 = vst [vmem:[#allocation1] ss:$4 sm:$0xff] %v1243_v7  ;;  %v1141_v63 = vmul.f32 1.442695, %v1108_v43  ;;  %v913_v58 = vpop.f32.mrf.mxu1  ;;  %v961_v2 = vsel %vm217_vm1, %v875_v13, %v934_v6 }
 0x14a   : > { %v1486_v10 = vpop.eup %1485  ;;  %v1245_v55 = vmax.f32 %v1221_v40, 0.0  ;;  %v1176_v11 = vadd.f32 1.0, %v1484_v44  ;;  %1491 = vpow2.f32 %v1139_v48  ;;  %v1143_v61 = vmul.f32 1.442695, %v1109_v60  ;;  %v878_v8 = vpop.f32.mrf.mxu0 }
 0x14b   : > { %v1488_v14 = vpop.eup %1487  ;;  %v1246_v51 = vmax.f32 %v1222_v34, 0.0  ;;  %1293 = vst [vmem:[#allocation1 + $0x1] ss:$4 sm:$0xff] %v1244_v28  ;;  %v1177_v29 = vadd.f32 1.0, %v1486_v10  ;;  %1493 = vpow2.f32 %v1141_v63  ;;  %v1145_v0 = vmul.f32 1.442695, %v1110_v16 }
 0x14c   : > { %1295 = vst [vmem:[#allocation1 + $0x2] ss:$4 sm:$0xff] %v1245_v55  ;;  %v1178_v46 = vadd.f32 1.0, %v1488_v14  ;;  %1495 = vrcp.f32 %v1176_v11  ;;  %v963_v23 = vsel %vm427_vm5, %v934_v6, %v875_v13  ;;  %v962_v25 = vrot.slane %v961_v2, 4 }
 0x14d   : > { %1298 = vst [vmem:[#allocation1 + $0x20] ss:$4 sm:$0xff] %v1246_v51  ;;  %1497 = vrcp.f32 %v1177_v29  ;;  %v964_v4 = vrot.slane %v963_v23, 6  ;;  %v1994_v18 = vadd.f32 %v958_v54, %v1886_v41  ;;  %v2000_v59 = vadd.f32 %v709_v62, %v464_v53 }
 0x14e   : > { %v1490_v33 = vpop.eup %1489  ;;  %1499 = vrcp.f32 %v1178_v46  ;;  %v2003_v19 = vadd.f32 %v960_v30, %v1890_v49  ;;  %v935_v13 = vrot.slane %v913_v58, 6  ;;  %v2007_v41 = vadd.f32 %v962_v25, %v1902_v52 }
 0x14f   : > { %v1223_v6 = vadd.f32 %v1490_v33, %v1924_v15  ;;  %1501 = vpow2.f32 %v1143_v61  ;;  %v2010_v54 = vadd.f32 %v964_v4, %v1906_v26  ;;  %v1063_v39 = vrot.slane %v1994_v18, 2 }
 0x150   : > { %v1492_v36 = vpop.eup %1491  ;;  %1503 = vpow2.f32 %v1145_v0  ;;  %v1064_v53 = vrot.slane %v2003_v19, 2  ;;  %v965_v22 = vsel %vm212_vm2, %v878_v8, %v935_v13  ;;  %v1065_v26 = vrot.slane %v2007_v41, 2 }
 0x151   : > { %v1494_v49 = vpop.eup %1493  ;;  %v1247_v52 = vmax.f32 %v1223_v6, 0.0  ;;  %v1179_v15 = vadd.f32 1.0, %v1492_v36  ;;  %v1066_v62 = vrot.slane %v2010_v54, 2  ;;  %v1111_v38 = vsub.f32 0.0, %v1063_v39  ;;  %v916_v14 = vpop.f32.mrf.mxu1 }
 0x152   : > { %v1496_v56 = vpop.eup %1495  ;;  %v1180_v37 = vadd.f32 1.0, %v1494_v49  ;;  %v1112_v21 = vsub.f32 0.0, %v1064_v53  ;;  %v966_v1 = vsel %vm214_vm0, %v878_v8, %v935_v13  ;;  %v1113_v60 = vsub.f32 0.0, %v1065_v26  ;;  %v881_v4 = vpop.f32.mrf.mxu0 }
 0x153   : > { %v1498_v5 = vpop.eup %1497  ;;  %v1224_v7 = vadd.f32 %v1496_v56, %v1933_v17  ;;  %v1296_v43 = vld.sshfl [vmem:[#allocation1] sm:$0xff pattern:$0x73625140]  ;;  %1300 = vst [vmem:[#allocation1 + $0x21] ss:$4 sm:$0xff] %v1247_v52  ;;  %1505 = vrcp.f32 %v1179_v15  ;;  %v968_v12 = vsel %vm217_vm1, %v878_v8, %v935_v13  ;;  %v1114_v48 = vsub.f32 0.0, %v1066_v62 }
 0x154   : > { %v1500_v40 = vpop.eup %1499  ;;  %v1225_v16 = vadd.f32 %v1498_v5, %v1936_v35  ;;  %1336 = vst [vmem:[%s2020_s29] sm:$0x3f] %v1296_v43  ;;  %1507 = vrcp.f32 %v1180_v37  ;;  %v1147_v44 = vmul.f32 1.442695, %v1111_v38  ;;  %v1149_v30 = vmul.f32 1.442695, %v1112_v21 }
 0x155   : > { %v1502_v34 = vpop.eup %1501  ;;  %v1226_v28 = vadd.f32 %v1500_v40, %v1939_v50  ;;  %v1248_v63 = vmax.f32 %v1224_v7, 0.0  ;;  %v1151_v10 = vmul.f32 1.442695, %v1113_v60  ;;  %v1153_v61 = vmul.f32 1.442695, %v1114_v48 }
 0x156   : > { %v1504_v17 = vpop.eup %1503  ;;  %v1249_v55 = vmax.f32 %v1225_v16, 0.0  ;;  %v1181_v11 = vadd.f32 1.0, %v1502_v34  ;;  %1509 = vpow2.f32 %v1147_v44  ;;  %v967_v35 = vrot.slane %v966_v1, 2 }
 0x157   : > { %v1250_v51 = vmax.f32 %v1226_v28, 0.0  ;;  %1302 = vst [vmem:[#allocation1 + $0x22] ss:$4 sm:$0xff] %v1248_v63  ;;  %v1182_v29 = vadd.f32 1.0, %v1504_v17  ;;  %1511 = vpow2.f32 %v1149_v30  ;;  %v969_v0 = vrot.slane %v968_v12, 4 }
 0x158   : > { %1304 = vst [vmem:[#allocation1] ss:$4 sm:$0xff] %v1249_v55  ;;  %1513 = vrcp.f32 %v1181_v11  ;;  %v970_v58 = vsel %vm427_vm5, %v935_v13, %v878_v8  ;;  %v2032_v50 = vadd.f32 %v965_v22, %v1913_v45  ;;  %v2035_v23 = vadd.f32 %v967_v35, %v1917_v27 }
 0x159   : > { %v1506_v46 = vpop.eup %1505  ;;  %1305 = vst [vmem:[#allocation1 + $0x1] ss:$4 sm:$0xff] %v1250_v51  ;;  %1515 = vrcp.f32 %v1182_v29  ;;  %v971_v2 = vrot.slane %v970_v58, 6  ;;  %v936_v25 = vrot.slane %v916_v14, 6  ;;  %v2039_v36 = vadd.f32 %v969_v0, %v1928_v20 }
 0x15a   : > { %v1508_v33 = vpop.eup %1507  ;;  %v1227_v6 = vadd.f32 %v1506_v46, %v1966_v24  ;;  %1517 = vpow2.f32 %v1151_v10  ;;  %v1067_v8 = vrot.slane %v2032_v50, 2  ;;  %v1068_v27 = vrot.slane %v2035_v23, 2 }
 0x15b   : > { %v1228_v45 = vadd.f32 %v1508_v33, %v1973_v3  ;;  %1519 = vpow2.f32 %v1153_v61  ;;  %v2044_v13 = vadd.f32 %v971_v2, %v1948_v9  ;;  %v1069_v22 = vrot.slane %v2039_v36, 2 }
 0x15c   : > { %v1510_v39 = vpop.eup %1509  ;;  %v1251_v53 = vmax.f32 %v1227_v6, 0.0  ;;  %v1115_v24 = vsub.f32 0.0, %v1067_v8  ;;  %v972_v49 = vsel %vm212_vm2, %v881_v4, %v936_v25  ;;  %v1116_v3 = vsub.f32 0.0, %v1068_v27 }
 0x15d   : > { %v1512_v20 = vpop.eup %1511  ;;  %v1252_v52 = vmax.f32 %v1228_v45, 0.0  ;;  %v1183_v15 = vadd.f32 1.0, %v1510_v39  ;;  %v1070_v26 = vrot.slane %v2044_v13, 2  ;;  %v973_v37 = vsel %vm214_vm0, %v881_v4, %v936_v25 }
 0x15e   : > { %v1514_v62 = vpop.eup %1513  ;;  %v1303_v56 = vld.sshfl [vmem:[#allocation1 + $0x20] sm:$0xff pattern:$0x73625140]  ;;  %1306 = vst [vmem:[#allocation1 + $0x2] ss:$4 sm:$0xff] %v1251_v53  ;;  %v1184_v9 = vadd.f32 1.0, %v1512_v20  ;;  %v975_v38 = vsel %vm217_vm1, %v881_v4, %v936_v25  ;;  %v977_v21 = vsel %vm427_vm5, %v936_v25, %v881_v4 }
 0x15f   : > { %v1516_v1 = vpop.eup %1515  ;;  %1337 = vst [vmem:[%s2020_s29 + $0x8] sm:$0x3f] %v1303_v56  ;;  %v1229_v5 = vadd.f32 %v1514_v62, %v1976_v57  ;;  %1521 = vrcp.f32 %v1183_v15  ;;  %v1117_v7 = vsub.f32 0.0, %v1069_v22  ;;  %v1118_v43 = vsub.f32 0.0, %v1070_v26 }
 0x160   : > { %v1518_v60 = vpop.eup %1517  ;;  %v1230_v12 = vadd.f32 %v1516_v1, %v1979_v31  ;;  %1308 = vst [vmem:[#allocation1 + $0x20] ss:$4 sm:$0xff] %v1252_v52  ;;  %1523 = vrcp.f32 %v1184_v9  ;;  %v1155_v40 = vmul.f32 1.442695, %v1115_v24  ;;  %v1157_v16 = vmul.f32 1.442695, %v1116_v3 }
 0x161   : > { %v1520_v48 = vpop.eup %1519  ;;  %v1253_v44 = vmax.f32 %v1229_v5, 0.0  ;;  %v1185_v34 = vadd.f32 1.0, %v1518_v60  ;;  %v1159_v28 = vmul.f32 1.442695, %v1117_v7  ;;  %v1161_v63 = vmul.f32 1.442695, %v1118_v43 }
 0x162   : > { %v1254_v30 = vmax.f32 %v1230_v12, 0.0  ;;  %v1186_v10 = vadd.f32 1.0, %v1520_v48  ;;  %1525 = vpow2.f32 %v1155_v40  ;;  %v974_v17 = vrot.slane %v973_v37, 2 }
 0x163   : > { %1309 = vst [vmem:[#allocation1 + $0x21] ss:$4 sm:$0xff] %v1253_v44  ;;  %1527 = vrcp.f32 %v1185_v34  ;;  %v976_v57 = vrot.slane %v975_v38, 4  ;;  %v978_v55 = vrot.slane %v977_v21, 6  ;;  %v2057_v31 = vadd.f32 %v972_v49, %v1955_v47 }
 0x164   : > { %1310 = vst [vmem:[#allocation1 + $0x22] ss:$4 sm:$0xff] %v1254_v30  ;;  %1529 = vrcp.f32 %v1186_v10  ;;  %v2060_v11 = vadd.f32 %v974_v17, %v1959_v32 }
 0x165   : > { %v1522_v61 = vpop.eup %1521  ;;  %v1307_v14 = vld.sshfl [vmem:[#allocation1] sm:$0xff pattern:$0x73625140]  ;;  %1531 = vpow2.f32 %v1157_v16  ;;  %v2063_v51 = vadd.f32 %v976_v57, %v1970_v42  ;;  %v2066_v29 = vadd.f32 %v978_v55, %v2000_v59  ;;  %v1071_v35 = vrot.slane %v2057_v31, 2 }
 0x166   : > { %v1524_v0 = vpop.eup %1523  ;;  %1338 = vst [vmem:[%s2020_s29 + $0x10] sm:$0x3f] %v1307_v14  ;;  %v1231_v47 = vadd.f32 %v1522_v61, %v1994_v18  ;;  %1533 = vpow2.f32 %v1159_v28  ;;  %v1072_v58 = vrot.slane %v2060_v11, 2 }
 0x167   : > { %v1232_v32 = vadd.f32 %v1524_v0, %v2003_v19  ;;  %1535 = vpow2.f32 %v1161_v63  ;;  %v1073_v46 = vrot.slane %v2063_v51, 2  ;;  %v1074_v42 = vrot.slane %v2066_v29, 2 }
 0x168   : > { %v1526_v2 = vpop.eup %1525  ;;  %v1255_v25 = vmax.f32 %v1231_v47, 0.0  ;;  %v1119_v59 = vsub.f32 0.0, %v1071_v35  ;;  %v1120_v4 = vsub.f32 0.0, %v1072_v58 }
 0x169   : > { %v1528_v33 = vpop.eup %1527  ;;  %v1256_v6 = vmax.f32 %v1232_v32, 0.0  ;;  %v1187_v8 = vadd.f32 1.0, %v1526_v2  ;;  %v1121_v45 = vsub.f32 0.0, %v1073_v46  ;;  %v1122_v18 = vsub.f32 0.0, %v1074_v42 }
 0x16a   : > { %v1530_v27 = vpop.eup %1529  ;;  %v1233_v39 = vadd.f32 %v1528_v33, %v2007_v41  ;;  %1312 = vst [vmem:[#allocation1] ss:$4 sm:$0xff] %v1255_v25  ;;  %v1163_v19 = vmul.f32 1.442695, %v1119_v59  ;;  %v1165_v53 = vmul.f32 1.442695, %v1120_v4 }
 0x16b   : > { %v1532_v22 = vpop.eup %1531  ;;  %v1311_v24 = vld.sshfl [vmem:[#allocation1 + $0x20] sm:$0xff pattern:$0x73625140]  ;;  %v1234_v49 = vadd.f32 %v1530_v27, %v2010_v54  ;;  %1313 = vst [vmem:[#allocation1 + $0x1] ss:$4 sm:$0xff] %v1256_v6  ;;  %1537 = vrcp.f32 %v1187_v8 }
 0x16c   : > { %v1534_v20 = vpop.eup %1533  ;;  %1339 = vst [vmem:[%s2020_s29 + $0x18] sm:$0x3f] %v1311_v24  ;;  %v1257_v52 = vmax.f32 %v1233_v39, 0.0  ;;  %v1188_v15 = vadd.f32 1.0, %v1532_v22  ;;  %1539 = vpow2.f32 %v1163_v19  ;;  %v1167_v56 = vmul.f32 1.442695, %v1121_v45 }
 0x16d   : > { %v1536_v26 = vpop.eup %1535  ;;  %v1258_v3 = vmax.f32 %v1234_v49, 0.0  ;;  %v1189_v62 = vadd.f32 1.0, %v1534_v20  ;;  %1541 = vpow2.f32 %v1165_v53  ;;  %v1169_v9 = vmul.f32 1.442695, %v1122_v18 }
 0x16e   : > { %1314 = vst [vmem:[#allocation1 + $0x2] ss:$4 sm:$0xff] %v1257_v52  ;;  %v1190_v41 = vadd.f32 1.0, %v1536_v26  ;;  %1543 = vrcp.f32 %v1188_v15 }
 0x16f   : > { %1316 = vst [vmem:[#allocation1 + $0x20] ss:$4 sm:$0xff] %v1258_v3  ;;  %1545 = vrcp.f32 %v1189_v62 }
 0x170   : > { %1547 = vrcp.f32 %v1190_v41 }
 0x171   : > { %v1538_v54 = vpop.eup %1537  ;;  %1549 = vpow2.f32 %v1167_v56 }
 0x172   : > { %v1540_v37 = vpop.eup %1539  ;;  %v1235_v38 = vadd.f32 %v1538_v54, %v2032_v50  ;;  %1551 = vpow2.f32 %v1169_v9 }
 0x173   : > { %v1542_v21 = vpop.eup %1541  ;;  %v1191_v1 = vadd.f32 1.0, %v1540_v37 }
 0x174   : > { %v1544_v5 = vpop.eup %1543  ;;  %v1259_v7 = vmax.f32 %v1235_v38, 0.0  ;;  %v1192_v43 = vadd.f32 1.0, %v1542_v21 }
 0x175   : > { %v1546_v60 = vpop.eup %1545  ;;  %v1315_v12 = vld.sshfl [vmem:[#allocation1] sm:$0xff pattern:$0x73625140]  ;;  %v1236_v40 = vadd.f32 %v1544_v5, %v2035_v23  ;;  %1553 = vrcp.f32 %v1191_v1 }
 0x176   : > { %v1548_v16 = vpop.eup %1547  ;;  %1340 = vst [vmem:[%s2020_s29 + $0x20] sm:$0x3f] %v1315_v12  ;;  %v1237_v48 = vadd.f32 %v1546_v60, %v2039_v36  ;;  %1555 = vrcp.f32 %v1192_v43 }
 0x177   : > { %v1550_v44 = vpop.eup %1549  ;;  %v1238_v34 = vadd.f32 %v1548_v16, %v2044_v13  ;;  %v1260_v50 = vmax.f32 %v1236_v40, 0.0  ;;  %1317 = vst [vmem:[#allocation1 + $0x21] ss:$4 sm:$0xff] %v1259_v7 }
 0x178   : > { %v1552_v28 = vpop.eup %1551  ;;  %v1261_v63 = vmax.f32 %v1237_v48, 0.0  ;;  %v1193_v30 = vadd.f32 1.0, %v1550_v44 }
 0x179   : > { %v1262_v10 = vmax.f32 %v1238_v34, 0.0  ;;  %1318 = vst [vmem:[#allocation1 + $0x22] ss:$4 sm:$0xff] %v1260_v50  ;;  %v1194_v17 = vadd.f32 1.0, %v1552_v28 }
 0x17a   : > { %1320 = vst [vmem:[#allocation1] ss:$4 sm:$0xff] %v1261_v63  ;;  %1557 = vrcp.f32 %v1193_v30 }
 0x17b   : > { %v1554_v23 = vpop.eup %1553  ;;  %1321 = vst [vmem:[#allocation1 + $0x1] ss:$4 sm:$0xff] %v1262_v10  ;;  %1559 = vrcp.f32 %v1194_v17 }
 0x17c   : > { %v1556_v57 = vpop.eup %1555  ;;  %v1239_v36 = vadd.f32 %v1554_v23, %v2057_v31 }
 0x17d   : > { %v1240_v55 = vadd.f32 %v1556_v57, %v2060_v11 }
 0x17e   : > { %v1263_v13 = vmax.f32 %v1239_v36, 0.0 }
 0x17f   : > { %v1264_v61 = vmax.f32 %v1240_v55, 0.0 }
 0x180   : > { %v1558_v14 = vpop.eup %1557  ;;  %v1319_v35 = vld.sshfl [vmem:[#allocation1 + $0x20] sm:$0xff pattern:$0x73625140]  ;;  %1322 = vst [vmem:[#allocation1 + $0x2] ss:$4 sm:$0xff] %v1263_v13 }
 0x181   : > { %v1560_v0 = vpop.eup %1559  ;;  %1341 = vst [vmem:[%s2020_s29 + $0x28] sm:$0x3f] %v1319_v35  ;;  %v1241_v47 = vadd.f32 %v1558_v14, %v2063_v51 }
 0x182   : > { %v1242_v58 = vadd.f32 %v1560_v0, %v2066_v29  ;;  %1324 = vst [vmem:[#allocation1 + $0x20] ss:$4 sm:$0xff] %v1264_v61 }
 0x183   : > { %v1265_v32 = vmax.f32 %v1241_v47, 0.0 }
 0x184   : > { %v1266_v46 = vmax.f32 %v1242_v58, 0.0 }
 0x185   : > { %1325 = vst [vmem:[#allocation1 + $0x21] ss:$4 sm:$0xff] %v1265_v32 }
 0x186   : > { %1326 = vst [vmem:[#allocation1 + $0x22] ss:$4 sm:$0xff] %v1266_v46 }
 0x187   : > { %v1323_v31 = vld.sshfl [vmem:[#allocation1] sm:$0xff pattern:$0x73625140] }
 0x188   : > { %1342 = vst [vmem:[%s2020_s29 + $0x30] sm:$0x3f] %v1323_v31 }
 0x18d   : > { %v1327_v11 = vld.sshfl [vmem:[#allocation1 + $0x20] sm:$0xff pattern:$0x73625140] }
 0x18e   : > { %1343 = vst [vmem:[%s2020_s29 + $0x38] sm:$0x3f] %v1327_v11 }
 0x18f PF: > { %s13_s12 = sadd.s32 1, %s1567_s12  }
 0x190   : > { %p10_p4 = scmp.ge.s32.totalorder %s13_s12, 6  }
 0x192   :  { %12 = sbr.rel (!%p10_p4) target bundleno = 1 (0x1), region = 97 }

</bundles_post_ra>
